<compile_context>
chip_gen: v5e
topology: v5e:2x2
jax: 0.10.0
libtpu: 0.0.40
codegen_flags: <defaults>
</compile_context>

<pallas_src>
import jax
import jax.numpy as jnp
from jax.experimental import pallas as pl
from jax.experimental.pallas import tpu as pltpu

LANE = 128


# --------------------------------------------------------------------------- kernel

def actor_mlp_kernel(obs_ref, w1_ref, b1_ref, w2_ref, b2_ref, w3_ref, b3_ref,
                     out_ref):
    """One batch tile of the full MLP.  Weights/biases are VMEM-resident."""
    w_dtype = w1_ref.dtype                      # compute dtype (bf16 or f32)

    x = obs_ref[...]                            # (TM, Din_pad), already compute dtype

    # Layer 1: MXU matmul with f32 accumulation; bias + ReLU in f32 on the VPU.
    h1 = jnp.dot(x, w1_ref[...], preferred_element_type=jnp.float32)
    h1 = jnp.maximum(h1 + b1_ref[...], 0.0).astype(w_dtype)

    # Layer 2
    h2 = jnp.dot(h1, w2_ref[...], preferred_element_type=jnp.float32)
    h2 = jnp.maximum(h2 + b2_ref[...], 0.0).astype(w_dtype)

    # Layer 3 (output head) -> lane-dense (TM, Aout_pad) store.
    y = jnp.dot(h2, w3_ref[...], preferred_element_type=jnp.float32)
    out_ref[...] = (y + b3_ref[...]).astype(out_ref.dtype)


# --------------------------------------------------------------------------- prep

def _round_up(x, m):
    return ((x + m - 1) // m) * m


def prepare_actor_params(params, *, compute_dtype=jnp.bfloat16):
    """Pad/cast the raw parameters ONCE (outside the per-step hot path).

    Raw params: w1/w2/w3 stored (in_features, out_features), biases (1, out_features).
    Padded columns of w3/b3 and padded rows of w1 are zero, so the math is unchanged.
    Biases stay f32 for the f32 bias+ReLU epilogue.
    """
    w1, b1, w2, b2, w3, b3 = (params["w1"], params["b1"], params["w2"],
                              params["b2"], params["w3"], params["b3"])
    obs_dim, hidden = w1.shape
    action_dim = w3.shape[1]
    d_in = _round_up(obs_dim, LANE)
    d_out = _round_up(action_dim, LANE)
    f32 = jnp.float32

    w1_p = jnp.zeros((d_in, hidden), compute_dtype).at[:obs_dim, :].set(
        w1.astype(compute_dtype))
    w2_p = w2.astype(compute_dtype)
    w3_p = jnp.zeros((hidden, d_out), compute_dtype).at[:, :action_dim].set(
        w3.astype(compute_dtype))
    b1_p = b1.reshape(1, hidden).astype(f32)
    b2_p = b2.reshape(1, hidden).astype(f32)
    b3_p = jnp.zeros((1, d_out), f32).at[:, :action_dim].set(
        b3.reshape(1, -1).astype(f32))

    # NOTE: the int fields are Python ints; if you jit `actor_forward`, close over the
    # prepared dict (or mark it static) instead of passing it as a traced argument.
    return {"w1": w1_p, "b1": b1_p, "w2": w2_p, "b2": b2_p, "w3": w3_p, "b3": b3_p,
            "obs_dim": int(obs_dim), "action_dim": int(action_dim)}


# --------------------------------------------------------------------------- forward

def _actor_forward_impl(obs, prepared, *, block_m, single_buffer_weights):
    w1, b1, w2, b2, w3, b3 = (prepared["w1"], prepared["b1"], prepared["w2"],
                              prepared["b2"], prepared["w3"], prepared["b3"])
    B, obs_dim = obs.shape
    d_in, hidden = w1.shape
    d_out = w3.shape[1]
    action_dim = prepared["action_dim"]
    compute_dtype = w1.dtype
    cbytes = jnp.dtype(compute_dtype).itemsize

    # Batch tile: round to the packed sublane tile of the compute dtype so tiny-batch
    # tiles are fully vectorized (16 rows bf16, 8 rows f32, 32 rows for 8-bit).
    sub = {1: 32, 2: 16}.get(cbytes, 8)
    tm = _round_up(min(block_m, _round_up(B, sub)), sub)
    b_pad = _round_up(B, tm)
    grid = (b_pad // tm,)

    # Only the activations are padded/cast per call (cheap: B x d_in).
    obs_p = jnp.zeros((b_pad, d_in), compute_dtype).at[:B, :obs_dim].set(
        obs.astype(compute_dtype))

    def resident(shape):
        # Constant index_map -> block never changes across grid steps; single-buffer it.
        if single_buffer_weights:
            return pl.BlockSpec(shape, lambda i: (0, 0), pipeline_mode=pl.Buffered(1))
        return pl.BlockSpec(shape, lambda i: (0, 0))

    weight_bytes = ((w1.size + w2.size + w3.size) * cbytes
                    + (b1.size + b2.size + b3.size) * 4)
    flops = 2 * b_pad * (d_in * hidden + hidden * hidden + hidden * d_out)
    bytes_accessed = obs_p.size * cbytes + weight_bytes + b_pad * d_out * 4
    cost = pl.CostEstimate(flops=flops, transcendentals=0,
                           bytes_accessed=bytes_accessed)

    # Only shard the batch across TensorCores when each tile is fat enough to amortize
    # the duplicated weight DMA (v7x megacore); tiny batches stay on one core.
    semantics = ("parallel",) if tm >= 256 else ("arbitrary",)
    cp_kwargs = dict(dimension_semantics=semantics)

    # v5e's default scoped VMEM is 16 MiB; raise the limit only when fat tiles need it.
    wbuf = 1 if single_buffer_weights else 2
    vmem_est = (2 * tm * d_in * cbytes + 2 * tm * d_out * 4
                + wbuf * weight_bytes + 6 * tm * hidden * 4)
    if vmem_est > 14 * 1024 * 1024:
        cp_kwargs["vmem_limit_bytes"] = min(int(vmem_est * 3 // 2), 64 * 1024 * 1024)

    out = pl.pallas_call(
        actor_mlp_kernel,
        out_shape=jax.ShapeDtypeStruct((b_pad, d_out), jnp.float32),
        grid_spec=pl.GridSpec(
            grid=grid,
            in_specs=[
                pl.BlockSpec((tm, d_in), lambda i: (i, 0)),       # obs tile (pipelined)
                resident((d_in, hidden)), resident((1, hidden)),   # w1, b1
                resident((hidden, hidden)), resident((1, hidden)), # w2, b2
                resident((hidden, d_out)), resident((1, d_out)),   # w3, b3
            ],
            out_specs=pl.BlockSpec((tm, d_out), lambda i: (i, 0)),
        ),
        compiler_params=pltpu.CompilerParams(**cp_kwargs),
        cost_estimate=cost,
    )(obs_p, w1, b1, w2, b2, w3, b3)

    return out[:B, :action_dim]


def actor_forward(obs, prepared, *, block_m=512, single_buffer_weights=True):
    """obs: (B, obs_dim) f32.  prepared: output of prepare_actor_params."""
    try:
        return _actor_forward_impl(obs, prepared, block_m=block_m,
                                   single_buffer_weights=single_buffer_weights)
    except Exception:
        if not single_buffer_weights:
            raise
        # Fallback for jax versions where pipeline_mode=pl.Buffered(1) is not accepted
        # on top-level pallas_call BlockSpecs (correctness is identical, VMEM use x2).
        return _actor_forward_impl(obs, prepared, block_m=block_m,
                                   single_buffer_weights=False)


# --------------------------------------------------------------------------- init / ref

def init_actor_params(key, obs_dim, action_dim, hidden=256):
    """Deterministic init mimicking PyTorch nn.Linear default
    (uniform(-1/sqrt(fan_in), 1/sqrt(fan_in)))."""
    def linear(k, fan_in, fan_out):
        kw, kb = jax.random.split(k)
        bound = 1.0 / jnp.sqrt(fan_in)
        w = jax.random.uniform(kw, (fan_in, fan_out), jnp.float32, -bound, bound)
        b = jax.random.uniform(kb, (1, fan_out), jnp.float32, -bound, bound)
        return w, b

    k1, k2, k3 = jax.random.split(key, 3)
    w1, b1 = linear(k1, obs_dim, hidden)
    w2, b2 = linear(k2, hidden, hidden)
    w3, b3 = linear(k3, hidden, action_dim)
    return {"w1": w1, "b1": b1, "w2": w2, "b2": b2, "w3": w3, "b3": b3}


def actor_forward_ref(obs, p):
    h1 = jnp.maximum(obs @ p["w1"] + p["b1"], 0.0)
    h2 = jnp.maximum(h1 @ p["w2"] + p["b2"], 0.0)
    return h2 @ p["w3"] + p["b3"]


# --------------------------------------------------------------------------- main

if __name__ == "__main__":
    key = jax.random.PRNGKey(0)
    k_obs, k_obs2, k_obs3, k_params = jax.random.split(key, 4)

    obs_dim, action_dim = 16, 8
    raw_params = init_actor_params(k_params, obs_dim, action_dim)

    # Pad/cast ONCE, outside the hot path (bf16 by default; f32 option kept for callers
    # that need exact f32 activations, e.g. a training path).
    params_bf16 = prepare_actor_params(raw_params)                         # bf16 weights
    params_f32 = prepare_actor_params(raw_params, compute_dtype=jnp.float32)

    # Case 1: tiny per-env-step batch -> single grid step, packed 16-row bf16 tile.
    batch = 8
    obs = jax.random.normal(k_obs, (batch, obs_dim), jnp.float32)
    ref = actor_forward_ref(obs, raw_params)
    out = jax.block_until_ready(actor_forward(obs, params_bf16))
    assert out.shape == (batch, action_dim)
    assert jnp.allclose(out, ref, atol=5e-2, rtol=5e-2)

    out_f32 = jax.block_until_ready(actor_forward(obs, params_f32))
    assert jnp.allclose(out_f32, ref, atol=1e-4, rtol=1e-4)

    # Case 2: batch not a multiple of the sublane tile -> still one fat tile (no grid split
    # for small batches, so no duplicated weight DMA across cores).
    batch2 = 130
    obs2 = jax.random.normal(k_obs2, (batch2, obs_dim), jnp.float32)
    ref2 = actor_forward_ref(obs2, raw_params)
    out2 = jax.block_until_ready(actor_forward(obs2, params_bf16))
    assert out2.shape == (batch2, action_dim)
    assert jnp.allclose(out2, ref2, atol=5e-2, rtol=5e-2)

    # Case 3: training-scale batch -> multi-step grid with fat (256-row) parallel tiles.
    batch3 = 600
    obs3 = jax.random.normal(k_obs3, (batch3, obs_dim), jnp.float32)
    ref3 = actor_forward_ref(obs3, raw_params)
    out3 = jax.block_until_ready(actor_forward(obs3, params_bf16, block_m=256))
    assert out3.shape == (batch3, action_dim)
    assert jnp.allclose(out3, ref3, atol=5e-2, rtol=5e-2)

    # Case 4: f32 path with a small tile forcing a >1-step "arbitrary" grid.
    out4 = jax.block_until_ready(actor_forward(obs2, params_f32, block_m=64))
    assert jnp.allclose(out4, ref2, atol=1e-4, rtol=1e-4)

    print("KERNEL_OK")
</pallas_src>

<mosaic_0001>
module attributes {stable_mosaic.version = 11 : i64} {
  func.func @actor_mlp_kernel(%arg0: i32, %arg1: memref<16x128xbf16, #tpu.memory_space<vmem>>, %arg2: memref<128x256xbf16, #tpu.memory_space<vmem>>, %arg3: memref<1x256xf32, #tpu.memory_space<vmem>>, %arg4: memref<256x256xbf16, #tpu.memory_space<vmem>>, %arg5: memref<1x256xf32, #tpu.memory_space<vmem>>, %arg6: memref<256x128xbf16, #tpu.memory_space<vmem>>, %arg7: memref<1x128xf32, #tpu.memory_space<vmem>>, %arg8: memref<16x128xf32, #tpu.memory_space<vmem>>) attributes {dimension_semantics = [#tpu.dimension_semantics<arbitrary>], iteration_bounds = array<i64: 1>, scalar_prefetch = 0 : i64, scratch_operands = 0 : i64, tpu.core_type = #tpu.core_type<tc>, window_params = [{transform_indices = @transform_0, window_bounds = array<i64: 16, 128>}, {pipeline_mode = #tpu.pipeline_mode<synchronous>, transform_indices = @transform_1, window_bounds = array<i64: 128, 256>}, {pipeline_mode = #tpu.pipeline_mode<synchronous>, transform_indices = @transform_2, window_bounds = array<i64: 1, 256>}, {pipeline_mode = #tpu.pipeline_mode<synchronous>, transform_indices = @transform_3, window_bounds = array<i64: 256, 256>}, {pipeline_mode = #tpu.pipeline_mode<synchronous>, transform_indices = @transform_4, window_bounds = array<i64: 1, 256>}, {pipeline_mode = #tpu.pipeline_mode<synchronous>, transform_indices = @transform_5, window_bounds = array<i64: 256, 128>}, {pipeline_mode = #tpu.pipeline_mode<synchronous>, transform_indices = @transform_6, window_bounds = array<i64: 1, 128>}, {transform_indices = @transform_7, window_bounds = array<i64: 16, 128>}]} {
    %c0 = arith.constant 0 : index
    %c0_0 = arith.constant 0 : index
    %0 = vector.load %arg1[%c0, %c0_0] : memref<16x128xbf16, #tpu.memory_space<vmem>>, vector<16x128xbf16>
    %c0_1 = arith.constant 0 : index
    %c0_2 = arith.constant 0 : index
    %1 = vector.load %arg2[%c0_1, %c0_2] : memref<128x256xbf16, #tpu.memory_space<vmem>>, vector<128x256xbf16>
    %cst = arith.constant dense<0.000000e+00> : vector<16x256xf32>
    %2 = tpu.matmul %0, %1, %cst {dimension_numbers = #tpu.dot_dimension_numbers<[1], [0], [0], [1], [0, 0, 1, 1], [], []>} : vector<16x128xbf16>, vector<128x256xbf16>, vector<16x256xf32> -> vector<16x256xf32>
    %c0_3 = arith.constant 0 : index
    %c0_4 = arith.constant 0 : index
    %3 = vector.load %arg3[%c0_3, %c0_4] : memref<1x256xf32, #tpu.memory_space<vmem>>, vector<1x256xf32>
    %4 = vector.broadcast %3 : vector<1x256xf32> to vector<16x256xf32>
    %5 = arith.addf %2, %4 : vector<16x256xf32>
    %cst_5 = arith.constant 0.000000e+00 : f32
    %6 = vector.broadcast %cst_5 : f32 to vector<16x256xf32>
    %7 = arith.maximumf %5, %6 : vector<16x256xf32>
    %8 = arith.truncf %7 : vector<16x256xf32> to vector<16x256xbf16>
    %c0_6 = arith.constant 0 : index
    %c0_7 = arith.constant 0 : index
    %9 = vector.load %arg4[%c0_6, %c0_7] : memref<256x256xbf16, #tpu.memory_space<vmem>>, vector<256x256xbf16>
    %cst_8 = arith.constant dense<0.000000e+00> : vector<16x256xf32>
    %10 = tpu.matmul %8, %9, %cst_8 {dimension_numbers = #tpu.dot_dimension_numbers<[1], [0], [0], [1], [0, 0, 1, 1], [], []>} : vector<16x256xbf16>, vector<256x256xbf16>, vector<16x256xf32> -> vector<16x256xf32>
    %c0_9 = arith.constant 0 : index
    %c0_10 = arith.constant 0 : index
    %11 = vector.load %arg5[%c0_9, %c0_10] : memref<1x256xf32, #tpu.memory_space<vmem>>, vector<1x256xf32>
    %12 = vector.broadcast %11 : vector<1x256xf32> to vector<16x256xf32>
    %13 = arith.addf %10, %12 : vector<16x256xf32>
    %cst_11 = arith.constant 0.000000e+00 : f32
    %14 = vector.broadcast %cst_11 : f32 to vector<16x256xf32>
    %15 = arith.maximumf %13, %14 : vector<16x256xf32>
    %16 = arith.truncf %15 : vector<16x256xf32> to vector<16x256xbf16>
    %c0_12 = arith.constant 0 : index
    %c0_13 = arith.constant 0 : index
    %17 = vector.load %arg6[%c0_12, %c0_13] : memref<256x128xbf16, #tpu.memory_space<vmem>>, vector<256x128xbf16>
    %cst_14 = arith.constant dense<0.000000e+00> : vector<16x128xf32>
    %18 = tpu.matmul %16, %17, %cst_14 {dimension_numbers = #tpu.dot_dimension_numbers<[1], [0], [0], [1], [0, 0, 1, 1], [], []>} : vector<16x256xbf16>, vector<256x128xbf16>, vector<16x128xf32> -> vector<16x128xf32>
    %c0_15 = arith.constant 0 : index
    %c0_16 = arith.constant 0 : index
    %19 = vector.load %arg7[%c0_15, %c0_16] : memref<1x128xf32, #tpu.memory_space<vmem>>, vector<1x128xf32>
    %20 = vector.broadcast %19 : vector<1x128xf32> to vector<16x128xf32>
    %21 = arith.addf %18, %20 : vector<16x128xf32>
    %c0_17 = arith.constant 0 : index
    %c0_18 = arith.constant 0 : index
    %22 = vector.load %arg8[%c0_17, %c0_18] : memref<16x128xf32, #tpu.memory_space<vmem>>, vector<16x128xf32>
    tpu.vector_store %arg8[%c0_17, %c0_18], %21 {strides = array<i32>} : memref<16x128xf32, #tpu.memory_space<vmem>>, vector<16x128xf32>,
    return
  }
  func.func @transform_0(%arg0: i32) -> (i32, i32) {
    %c0_i32 = arith.constant 0 : i32
    %c0_i32_0 = arith.constant 0 : i32
    return %arg0, %c0_i32 : i32, i32
  }
  func.func @transform_1(%arg0: i32) -> (i32, i32) {
    %c0_i32 = arith.constant 0 : i32
    %c0_i32_0 = arith.constant 0 : i32
    %c0_i32_1 = arith.constant 0 : i32
    return %c0_i32, %c0_i32_0 : i32, i32
  }
  func.func @transform_2(%arg0: i32) -> (i32, i32) {
    %c0_i32 = arith.constant 0 : i32
    %c0_i32_0 = arith.constant 0 : i32
    %c0_i32_1 = arith.constant 0 : i32
    return %c0_i32, %c0_i32_0 : i32, i32
  }
  func.func @transform_3(%arg0: i32) -> (i32, i32) {
    %c0_i32 = arith.constant 0 : i32
    %c0_i32_0 = arith.constant 0 : i32
    %c0_i32_1 = arith.constant 0 : i32
    return %c0_i32, %c0_i32_0 : i32, i32
  }
  func.func @transform_4(%arg0: i32) -> (i32, i32) {
    %c0_i32 = arith.constant 0 : i32
    %c0_i32_0 = arith.constant 0 : i32
    %c0_i32_1 = arith.constant 0 : i32
    return %c0_i32, %c0_i32_0 : i32, i32
  }
  func.func @transform_5(%arg0: i32) -> (i32, i32) {
    %c0_i32 = arith.constant 0 : i32
    %c0_i32_0 = arith.constant 0 : i32
    %c0_i32_1 = arith.constant 0 : i32
    return %c0_i32, %c0_i32_0 : i32, i32
  }
  func.func @transform_6(%arg0: i32) -> (i32, i32) {
    %c0_i32 = arith.constant 0 : i32
    %c0_i32_0 = arith.constant 0 : i32
    %c0_i32_1 = arith.constant 0 : i32
    return %c0_i32, %c0_i32_0 : i32, i32
  }
  func.func @transform_7(%arg0: i32) -> (i32, i32) {
    %c0_i32 = arith.constant 0 : i32
    %c0_i32_0 = arith.constant 0 : i32
    return %arg0, %c0_i32 : i32, i32
  }
}

module attributes {stable_mosaic.version = 11 : i64} {
  func.func @actor_mlp_kernel(%arg0: i32, %arg1: memref<16x128xbf16, #tpu.memory_space<vmem>>, %arg2: memref<128x256xbf16, #tpu.memory_space<vmem>>, %arg3: memref<1x256xf32, #tpu.memory_space<vmem>>, %arg4: memref<256x256xbf16, #tpu.memory_space<vmem>>, %arg5: memref<1x256xf32, #tpu.memory_space<vmem>>, %arg6: memref<256x128xbf16, #tpu.memory_space<vmem>>, %arg7: memref<1x128xf32, #tpu.memory_space<vmem>>, %arg8: memref<16x128xf32, #tpu.memory_space<vmem>>) attributes {dimension_semantics = [#tpu.dimension_semantics<arbitrary>], iteration_bounds = array<i64: 1>, scalar_prefetch = 0 : i64, scratch_operands = 0 : i64, tpu.core_type = #tpu.core_type<tc>, window_params = [{transform_indices = @transform_0, window_bounds = array<i64: 16, 128>}, {pipeline_mode = #tpu.pipeline_mode<synchronous>, transform_indices = @transform_1, window_bounds = array<i64: 128, 256>}, {pipeline_mode = #tpu.pipeline_mode<synchronous>, transform_indices = @transform_2, window_bounds = array<i64: 1, 256>}, {pipeline_mode = #tpu.pipeline_mode<synchronous>, transform_indices = @transform_3, window_bounds = array<i64: 256, 256>}, {pipeline_mode = #tpu.pipeline_mode<synchronous>, transform_indices = @transform_4, window_bounds = array<i64: 1, 256>}, {pipeline_mode = #tpu.pipeline_mode<synchronous>, transform_indices = @transform_5, window_bounds = array<i64: 256, 128>}, {pipeline_mode = #tpu.pipeline_mode<synchronous>, transform_indices = @transform_6, window_bounds = array<i64: 1, 128>}, {transform_indices = @transform_7, window_bounds = array<i64: 16, 128>}]} {
    %c0 = arith.constant 0 : index
    %c0_0 = arith.constant 0 : index
    %0 = vector.load %arg1[%c0, %c0_0] : memref<16x128xbf16, #tpu.memory_space<vmem>>, vector<16x128xbf16>
    %c0_1 = arith.constant 0 : index
    %c0_2 = arith.constant 0 : index
    %1 = vector.load %arg2[%c0_1, %c0_2] : memref<128x256xbf16, #tpu.memory_space<vmem>>, vector<128x256xbf16>
    %cst = arith.constant dense<0.000000e+00> : vector<16x256xf32>
    %2 = tpu.matmul %0, %1, %cst {dimension_numbers = #tpu.dot_dimension_numbers<[1], [0], [0], [1], [0, 0, 1, 1], [], []>} : vector<16x128xbf16>, vector<128x256xbf16>, vector<16x256xf32> -> vector<16x256xf32>
    %c0_3 = arith.constant 0 : index
    %c0_4 = arith.constant 0 : index
    %3 = vector.load %arg3[%c0_3, %c0_4] : memref<1x256xf32, #tpu.memory_space<vmem>>, vector<1x256xf32>
    %4 = vector.broadcast %3 : vector<1x256xf32> to vector<16x256xf32>
    %5 = arith.addf %2, %4 : vector<16x256xf32>
    %cst_5 = arith.constant 0.000000e+00 : f32
    %6 = vector.broadcast %cst_5 : f32 to vector<16x256xf32>
    %7 = arith.maximumf %5, %6 : vector<16x256xf32>
    %8 = arith.truncf %7 : vector<16x256xf32> to vector<16x256xbf16>
    %c0_6 = arith.constant 0 : index
    %c0_7 = arith.constant 0 : index
    %9 = vector.load %arg4[%c0_6, %c0_7] : memref<256x256xbf16, #tpu.memory_space<vmem>>, vector<256x256xbf16>
    %cst_8 = arith.constant dense<0.000000e+00> : vector<16x256xf32>
    %10 = tpu.matmul %8, %9, %cst_8 {dimension_numbers = #tpu.dot_dimension_numbers<[1], [0], [0], [1], [0, 0, 1, 1], [], []>} : vector<16x256xbf16>, vector<256x256xbf16>, vector<16x256xf32> -> vector<16x256xf32>
    %c0_9 = arith.constant 0 : index
    %c0_10 = arith.constant 0 : index
    %11 = vector.load %arg5[%c0_9, %c0_10] : memref<1x256xf32, #tpu.memory_space<vmem>>, vector<1x256xf32>
    %12 = vector.broadcast %11 : vector<1x256xf32> to vector<16x256xf32>
    %13 = arith.addf %10, %12 : vector<16x256xf32>
    %cst_11 = arith.constant 0.000000e+00 : f32
    %14 = vector.broadcast %cst_11 : f32 to vector<16x256xf32>
    %15 = arith.maximumf %13, %14 : vector<16x256xf32>
    %16 = arith.truncf %15 : vector<16x256xf32> to vector<16x256xbf16>
    %c0_12 = arith.constant 0 : index
    %c0_13 = arith.constant 0 : index
    %17 = vector.load %arg6[%c0_12, %c0_13] : memref<256x128xbf16, #tpu.memory_space<vmem>>, vector<256x128xbf16>
    %cst_14 = arith.constant dense<0.000000e+00> : vector<16x128xf32>
    %18 = tpu.matmul %16, %17, %cst_14 {dimension_numbers = #tpu.dot_dimension_numbers<[1], [0], [0], [1], [0, 0, 1, 1], [], []>} : vector<16x256xbf16>, vector<256x128xbf16>, vector<16x128xf32> -> vector<16x128xf32>
    %c0_15 = arith.constant 0 : index
    %c0_16 = arith.constant 0 : index
    %19 = vector.load %arg7[%c0_15, %c0_16] : memref<1x128xf32, #tpu.memory_space<vmem>>, vector<1x128xf32>
    %20 = vector.broadcast %19 : vector<1x128xf32> to vector<16x128xf32>
    %21 = arith.addf %18, %20 : vector<16x128xf32>
    %c0_17 = arith.constant 0 : index
    %c0_18 = arith.constant 0 : index
    %22 = vector.load %arg8[%c0_17, %c0_18] : memref<16x128xf32, #tpu.memory_space<vmem>>, vector<16x128xf32>
    tpu.vector_store %arg8[%c0_17, %c0_18], %21 {strides = array<i32>} : memref<16x128xf32, #tpu.memory_space<vmem>>, vector<16x128xf32>,
    return
  }
  func.func @transform_0(%arg0: i32) -> (i32, i32) {
    %c0_i32 = arith.constant 0 : i32
    %c0_i32_0 = arith.constant 0 : i32
    return %arg0, %c0_i32 : i32, i32
  }
  func.func @transform_1(%arg0: i32) -> (i32, i32) {
    %c0_i32 = arith.constant 0 : i32
    %c0_i32_0 = arith.constant 0 : i32
    %c0_i32_1 = arith.constant 0 : i32
    return %c0_i32, %c0_i32_0 : i32, i32
  }
  func.func @transform_2(%arg0: i32) -> (i32, i32) {
    %c0_i32 = arith.constant 0 : i32
    %c0_i32_0 = arith.constant 0 : i32
    %c0_i32_1 = arith.constant 0 : i32
    return %c0_i32, %c0_i32_0 : i32, i32
  }
  func.func @transform_3(%arg0: i32) -> (i32, i32) {
    %c0_i32 = arith.constant 0 : i32
    %c0_i32_0 = arith.constant 0 : i32
    %c0_i32_1 = arith.constant 0 : i32
    return %c0_i32, %c0_i32_0 : i32, i32
  }
  func.func @transform_4(%arg0: i32) -> (i32, i32) {
    %c0_i32 = arith.constant 0 : i32
    %c0_i32_0 = arith.constant 0 : i32
    %c0_i32_1 = arith.constant 0 : i32
    return %c0_i32, %c0_i32_0 : i32, i32
  }
  func.func @transform_5(%arg0: i32) -> (i32, i32) {
    %c0_i32 = arith.constant 0 : i32
    %c0_i32_0 = arith.constant 0 : i32
    %c0_i32_1 = arith.constant 0 : i32
    return %c0_i32, %c0_i32_0 : i32, i32
  }
  func.func @transform_6(%arg0: i32) -> (i32, i32) {
    %c0_i32 = arith.constant 0 : i32
    %c0_i32_0 = arith.constant 0 : i32
    %c0_i32_1 = arith.constant 0 : i32
    return %c0_i32, %c0_i32_0 : i32, i32
  }
  func.func @transform_7(%arg0: i32) -> (i32, i32) {
    %c0_i32 = arith.constant 0 : i32
    %c0_i32_0 = arith.constant 0 : i32
    return %arg0, %c0_i32 : i32, i32
  }
}

</mosaic_0001>

<bundles_post_ra>
// kernel: tpu_custom_call.1
= control target key start
LH: loop header
LB: loop body
LE: loop exit
PB: predicated region body
PF: predicated region fallthrough
CT: control target
= control target key end

     0   :  { %12 = vsyncpa [#allocation3], 0  ;;  %s1261_s0 = inlined_call_operand.hbm [shape: bf16[16,128], index: 0, kind: input, shape index: {}]   ;;  %s1262_s1 = inlined_call_operand.hbm [shape: bf16[128,256], index: 1, kind: input, shape index: {}]   ;;  %s1263_s2 = inlined_call_operand.hbm [shape: f32[1,256], index: 2, kind: input, shape index: {}]   ;;  %s1264_s3 = inlined_call_operand.hbm [shape: bf16[256,256], index: 3, kind: input, shape index: {}]   ;;  %s1265_s4 = inlined_call_operand.vmem [shape: f32[1,256], index: 4, kind: input, shape index: {}]   ;;  %s1266_s5 = inlined_call_operand.hbm [shape: bf16[256,128], index: 5, kind: input, shape index: {}]   ;;  %s1267_s6 = inlined_call_operand.vmem [shape: f32[1,128], index: 6, kind: input, shape index: {}]   ;;  %s1268_s7 = inlined_call_operand.hbm [shape: f32[16,128], index: 7, kind: output, shape index: {}]  }
   0x1   :  { %13 = vsyncpa [#allocation6], 0 }
   0x2   :  { %14 = vsyncpa [#allocation9], 0  ;;  %s33_s26 = sshll.u32 %s1262_s1, 4  ;;  %s34_s26 = int_to_ptr.hbm [resolvable:$true] %s33_s26 }
   0x3   :  { %15 = vsyncpa [#allocation4], 0  ;;  %s1178_s27 = smov [#allocation5]   ;;  %s57_s8 = sshll.u32 %s1264_s3, 4  ;;  %s58_s8 = int_to_ptr.hbm [resolvable:$true] %s57_s8 }
   0x4   :  { %s35_s28 = sshll.u32 %s1178_s27, 4  ;;  %s1179_s9 = smov 128   ;;  %s36_s28 = int_to_ptr.vmem [resolvable:$true] %s35_s28 }
   0x5   :  { %s1180_s10 = smov 8   ;;  %s1181_s11 = smov [#allocation8]  }
   0x6   :  { %41 = dma.hbm_to_vmem [thread:$0]  %s34_s26, 2048, %s36_s28, [#allocation6], %s1179_s9, %s1179_s9, %s1180_s10  }
   0x7   :  { %s59_s12 = sshll.u32 %s1181_s11, 4  ;;  %s20_s14 = sshll.u32 %s1261_s0, 4  ;;  %s60_s12 = int_to_ptr.vmem [resolvable:$true] %s59_s12  ;;  %s21_s14 = int_to_ptr.hbm [resolvable:$true] %s20_s14 }
   0x8   :  { %65 = dma.hbm_to_vmem [thread:$0]  %s58_s8, 4096, %s60_s12, [#allocation9], %s1179_s9, %s1179_s9, %s1180_s10  }
   0x9   :  { %s1182_s3 = smov [#allocation2]   ;;  %s47_s18 = sshll.u32 %s1263_s2, 4  ;;  %s48_s18 = int_to_ptr.hbm [resolvable:$true] %s47_s18 }
   0xa   :  { %s22_s15 = sshll.u32 %s1182_s3, 4  ;;  %s1183_s19 = smov 64   ;;  %s23_s15 = int_to_ptr.vmem [resolvable:$true] %s22_s15 }
   0xb   :  { %s1184_s20 = smov 4   ;;  %s1185_s21 = smov [#allocation7]  }
   0xc   :  { %28 = dma.hbm_to_vmem [thread:$0]  %s21_s14, 128, %s23_s15, [#allocation3], %s1183_s19, %s1183_s19, %s1184_s20  }
   0xd   :  { %s49_s22 = sshll.u32 %s1185_s21, 4  ;;  %s72_s24 = sshll.u32 %s1266_s5, 4  ;;  %s50_s22 = int_to_ptr.vmem [resolvable:$true] %s49_s22  ;;  %s73_s24 = int_to_ptr.hbm [resolvable:$true] %s72_s24 }
   0xe   :  { %52 = dma.hbm_to_vmem [thread:$0]  %s48_s18, 32, %s50_s22, [#allocation6]  }
   0xf   :  { %s1186_s25 = smov [#allocation10]  }
  0x10   :  { %s74_s26 = sshll.u32 %s1186_s25, 4  ;;  %s75_s26 = int_to_ptr.vmem [resolvable:$true] %s74_s26 }
  0x11   :  { %80 = dma.hbm_to_vmem [thread:$0]  %s73_s24, 2048, %s75_s26, [#allocation9], %s1183_s19, %s1183_s19, %s1184_s20  }
  0x12   :  { %1170 = dma.done.wait [#allocation3], 128  }
  0x13   :  { %1171 = vsyncadd [#allocation3], 4294967168 }
  0x14   :  { %1172 = dma.done.wait [#allocation6], 2080  }
  0x15   :  { %1173 = vsyncadd [#allocation6], 4294965216 }
  0x16   :  { %1174 = dma.done.wait [#allocation9], 6144  }
  0x17   :  { %1175 = vsyncadd [#allocation9], 4294961152  ;;  %v752_v0 = vld [vmem:[#allocation5 + $0x70] sm:$0xf]  ;;  %v966_v1 = vld [vmem:[#allocation5 + $0x74] sm:$0xf0] }
  0x18   :  { %v965_v2 = vld [vmem:[#allocation5 + $0x74] sm:$0xf]  ;;  %v753_v3 = vor.u32 %v966_v1, %v752_v0  ;;  %v754_v4 = vld [vmem:[#allocation5 + $0x78] sm:$0xf0]  ;;  %v744_v5 = vld [vmem:[#allocation5 + $0x60] sm:$0xf] }
  0x19   :  { %v964_v6 = vld [vmem:[#allocation5 + $0x64] sm:$0xf0]  ;;  %v757_v7 = vor.u32 %v965_v2, %v754_v4  ;;  %v963_v8 = vld [vmem:[#allocation5 + $0x64] sm:$0xf]  ;;  %v746_v9 = vld [vmem:[#allocation5 + $0x68] sm:$0xf0] }
  0x1a   :  { %213 = vmatpush.bf16.msra.mxu0 %v753_v3  ;;  %v745_v10 = vor.u32 %v964_v6, %v744_v5  ;;  %v749_v11 = vor.u32 %v963_v8, %v746_v9  ;;  %v736_v12 = vld [vmem:[#allocation5 + $0x50] sm:$0xf]  ;;  %v962_v13 = vld [vmem:[#allocation5 + $0x54] sm:$0xf0]  ;;  %v961_v14 = vld [vmem:[#allocation5 + $0x54] sm:$0xf] }
  0x1b   :  { %227 = vmatpush.bf16.msra.mxu1 %v757_v7  ;;  %v738_v15 = vld [vmem:[#allocation5 + $0x58] sm:$0xf0]  ;;  %v737_v16 = vor.u32 %v962_v13, %v736_v12  ;;  %v728_v18 = vld [vmem:[#allocation5 + $0x40] sm:$0xf]  ;;  %v960_v19 = vld [vmem:[#allocation5 + $0x44] sm:$0xf0] }
  0x1c   :  { %v741_v17 = vor.u32 %v961_v14, %v738_v15  ;;  %v959_v20 = vld [vmem:[#allocation5 + $0x44] sm:$0xf]  ;;  %v730_v21 = vld [vmem:[#allocation5 + $0x48] sm:$0xf0]  ;;  %v729_v22 = vor.u32 %v960_v19, %v728_v18  ;;  %v816_v23 = vld [vmem:[#allocation8 + $0x70] sm:$0xf] }
  0x1d   :  { %v982_v24 = vld [vmem:[#allocation8 + $0x74] sm:$0xf0]  ;;  %v880_v25 = vld [vmem:[#allocation8 + $0xf0] sm:$0xf]  ;;  %v733_v26 = vor.u32 %v959_v20, %v730_v21  ;;  %v808_v34 = vld [vmem:[#allocation8 + $0x60] sm:$0xf] }
  0x1e   :  { %214 = vmatpush.bf16.msra.mxu0 %v745_v10  ;;  %v720_v27 = vld [vmem:[#allocation5 + $0x30] sm:$0xf]  ;;  %v958_v28 = vld [vmem:[#allocation5 + $0x34] sm:$0xf0]  ;;  %v817_v29 = vor.u32 %v982_v24, %v816_v23  ;;  %v957_v31 = vld [vmem:[#allocation5 + $0x34] sm:$0xf] }
  0x1f   :  { %228 = vmatpush.bf16.msra.mxu1 %v749_v11  ;;  %v998_v30 = vld [vmem:[#allocation8 + $0xf4] sm:$0xf0]  ;;  %v980_v35 = vld [vmem:[#allocation8 + $0x64] sm:$0xf0]  ;;  %v872_v36 = vld [vmem:[#allocation8 + $0xe0] sm:$0xf]  ;;  %v721_v38 = vor.u32 %v958_v28, %v720_v27 }
  0x20   :  { %v722_v32 = vld [vmem:[#allocation5 + $0x38] sm:$0xf0]  ;;  %v881_v33 = vor.u32 %v998_v30, %v880_v25  ;;  %445 = vmatpush.bf16.msra.mxu2 %v817_v29  ;;  %v996_v37 = vld [vmem:[#allocation8 + $0xe4] sm:$0xf0]  ;;  %v712_v39 = vld [vmem:[#allocation5 + $0x20] sm:$0xf]  ;;  %v809_v41 = vor.u32 %v980_v35, %v808_v34 }
  0x21   :  { %v956_v40 = vld [vmem:[#allocation5 + $0x24] sm:$0xf0]  ;;  %v873_v42 = vor.u32 %v996_v37, %v872_v36  ;;  %v725_v43 = vor.u32 %v957_v31, %v722_v32  ;;  %v955_v44 = vld [vmem:[#allocation5 + $0x24] sm:$0xf]  ;;  %v800_v45 = vld [vmem:[#allocation8 + $0x50] sm:$0xf] }
  0x22   :  { %215 = vmatpush.bf16.msra.mxu0 %v737_v16  ;;  %459 = vmatpush.bf16.msra.mxu3 %v881_v33  ;;  %v978_v46 = vld [vmem:[#allocation8 + $0x54] sm:$0xf0]  ;;  %v714_v47 = vld [vmem:[#allocation5 + $0x28] sm:$0xf0]  ;;  %v864_v48 = vld [vmem:[#allocation8 + $0xd0] sm:$0xf]  ;;  %v713_v51 = vor.u32 %v956_v40, %v712_v39 }
  0x23   :  { %229 = vmatpush.bf16.msra.mxu1 %v741_v17  ;;  %v994_v49 = vld [vmem:[#allocation8 + $0xd4] sm:$0xf0]  ;;  %v801_v50 = vor.u32 %v978_v46, %v800_v45  ;;  %v704_v52 = vld [vmem:[#allocation5 + $0x10] sm:$0xf]  ;;  %v792_v54 = vld [vmem:[#allocation8 + $0x40] sm:$0xf]  ;;  %v717_v56 = vor.u32 %v955_v44, %v714_v47 }
  0x24   :  { %446 = vmatpush.bf16.msra.mxu2 %v809_v41  ;;  %v865_v53 = vor.u32 %v994_v49, %v864_v48  ;;  %v976_v55 = vld [vmem:[#allocation8 + $0x44] sm:$0xf0]  ;;  %v954_v57 = vld [vmem:[#allocation5 + $0x14] sm:$0xf0]  ;;  %v856_v58 = vld [vmem:[#allocation8 + $0xc0] sm:$0xf] }
  0x25   :  { %v992_v59 = vld [vmem:[#allocation8 + $0xc4] sm:$0xf0]  ;;  %v953_v60 = vld [vmem:[#allocation5 + $0x14] sm:$0xf]  ;;  %v706_v61 = vld [vmem:[#allocation5 + $0x18] sm:$0xf0]  ;;  %v793_v62 = vor.u32 %v976_v55, %v792_v54  ;;  %v705_v63 = vor.u32 %v954_v57, %v704_v52 }
  0x26   :  { %216 = vmatpush.bf16.msra.mxu0 %v729_v22  ;;  %460 = vmatpush.bf16.msra.mxu3 %v873_v42  ;;  %v857_v0 = vor.u32 %v992_v59, %v856_v58  ;;  %v709_v1 = vor.u32 %v953_v60, %v706_v61  ;;  %v696_v2 = vld [vmem:[#allocation5] sm:$0xf]  ;;  %v952_v3 = vld [vmem:[#allocation5 + $0x4] sm:$0xf0]  ;;  %v951_v4 = vld [vmem:[#allocation5 + $0x4] sm:$0xf] }
  0x27   :  { %230 = vmatpush.bf16.msra.mxu1 %v733_v26  ;;  %v698_v5 = vld [vmem:[#allocation5 + $0x8] sm:$0xf0]  ;;  %v981_v6 = vld [vmem:[#allocation8 + $0x74] sm:$0xf]  ;;  %v818_v7 = vld [vmem:[#allocation8 + $0x78] sm:$0xf0]  ;;  %v697_v10 = vor.u32 %v952_v3, %v696_v2 }
  0x28   :  { %447 = vmatpush.bf16.msra.mxu2 %v801_v50  ;;  %v997_v8 = vld [vmem:[#allocation8 + $0xf4] sm:$0xf]  ;;  %v882_v9 = vld [vmem:[#allocation8 + $0xf8] sm:$0xf0]  ;;  %v701_v11 = vor.u32 %v951_v4, %v698_v5  ;;  %v821_v12 = vor.u32 %v981_v6, %v818_v7  ;;  %v979_v14 = vld [vmem:[#allocation8 + $0x64] sm:$0xf] }
  0x29   :  { %v885_v13 = vor.u32 %v997_v8, %v882_v9  ;;  %v810_v15 = vld [vmem:[#allocation8 + $0x68] sm:$0xf0]  ;;  %v950_v16 = vld [vmem:[#allocation2] sm:$0xff]  ;;  %v995_v17 = vld [vmem:[#allocation8 + $0xe4] sm:$0xf]  ;;  %s1187_s28 = smov [#allocation11]  }
  0x2a   :  { %217 = vmatpush.bf16.msra.mxu0 %v721_v38  ;;  %461 = vmatpush.bf16.msra.mxu3 %v865_v53  ;;  %v874_v18 = vld [vmem:[#allocation8 + $0xe8] sm:$0xf0]  ;;  %v813_v19 = vor.u32 %v979_v14, %v810_v15  ;;  %v977_v21 = vld [vmem:[#allocation8 + $0x54] sm:$0xf]  ;;  %v802_v22 = vld [vmem:[#allocation8 + $0x58] sm:$0xf0] }
  0x2b   :  { %231 = vmatpush.bf16.msra.mxu1 %v725_v43  ;;  %v877_v20 = vor.u32 %v995_v17, %v874_v18  ;;  %v993_v23 = vld [vmem:[#allocation8 + $0xd4] sm:$0xf]  ;;  %v866_v24 = vld [vmem:[#allocation8 + $0xd8] sm:$0xf0]  ;;  %v805_v25 = vor.u32 %v977_v21, %v802_v22  ;;  %v975_v27 = vld [vmem:[#allocation8 + $0x44] sm:$0xf] }
  0x2c   :  { %448 = vmatpush.bf16.msra.mxu2 %v793_v62  ;;  %v869_v26 = vor.u32 %v993_v23, %v866_v24  ;;  %v794_v28 = vld [vmem:[#allocation8 + $0x48] sm:$0xf0]  ;;  %v991_v29 = vld [vmem:[#allocation8 + $0xc4] sm:$0xf]  ;;  %v784_v33 = vld [vmem:[#allocation8 + $0x30] sm:$0xf] }
  0x2d   :  { %v858_v30 = vld [vmem:[#allocation8 + $0xc8] sm:$0xf0]  ;;  %v797_v31 = vor.u32 %v975_v27, %v794_v28  ;;  %v974_v34 = vld [vmem:[#allocation8 + $0x34] sm:$0xf0]  ;;  %v848_v35 = vld [vmem:[#allocation8 + $0xb0] sm:$0xf] }
  0x2e   :  { %218 = vmatpush.bf16.msra.mxu0 %v713_v51  ;;  %462 = vmatpush.bf16.msra.mxu3 %v857_v0  ;;  %v861_v32 = vor.u32 %v991_v29, %v858_v30  ;;  %v785_v36 = vor.u32 %v974_v34, %v784_v33  ;;  %v990_v37 = vld [vmem:[#allocation8 + $0xb4] sm:$0xf0]  ;;  %v973_v38 = vld [vmem:[#allocation8 + $0x34] sm:$0xf]  ;;  %v786_v39 = vld [vmem:[#allocation8 + $0x38] sm:$0xf0] }
  0x2f   :  { %232 = vmatpush.bf16.msra.mxu1 %v717_v56  ;;  %v849_v40 = vor.u32 %v990_v37, %v848_v35  ;;  %v789_v41 = vor.u32 %v973_v38, %v786_v39  ;;  %v989_v42 = vld [vmem:[#allocation8 + $0xb4] sm:$0xf]  ;;  %v850_v43 = vld [vmem:[#allocation8 + $0xb8] sm:$0xf0]  ;;  %v776_v45 = vld [vmem:[#allocation8 + $0x20] sm:$0xf] }
  0x30   :  { %449 = vmatpush.bf16.msra.mxu2 %v785_v36  ;;  %v853_v44 = vor.u32 %v989_v42, %v850_v43  ;;  %v972_v46 = vld [vmem:[#allocation8 + $0x24] sm:$0xf0]  ;;  %v840_v48 = vld [vmem:[#allocation8 + $0xa0] sm:$0xf]  ;;  %v971_v50 = vld [vmem:[#allocation8 + $0x24] sm:$0xf] }
  0x31   :  { %v777_v47 = vor.u32 %v972_v46, %v776_v45  ;;  %v988_v49 = vld [vmem:[#allocation8 + $0xa4] sm:$0xf0]  ;;  %v778_v52 = vld [vmem:[#allocation8 + $0x28] sm:$0xf0]  ;;  %v987_v53 = vld [vmem:[#allocation8 + $0xa4] sm:$0xf] }
  0x32   :  { %219 = vmatpush.bf16.msra.mxu0 %v705_v63  ;;  %463 = vmatpush.bf16.msra.mxu3 %v849_v40  ;;  %v841_v51 = vor.u32 %v988_v49, %v840_v48  ;;  %v842_v54 = vld [vmem:[#allocation8 + $0xa8] sm:$0xf0]  ;;  %v781_v55 = vor.u32 %v971_v50, %v778_v52  ;;  %v768_v57 = vld [vmem:[#allocation8 + $0x10] sm:$0xf]  ;;  %v970_v58 = vld [vmem:[#allocation8 + $0x14] sm:$0xf0] }
  0x33   :  { %233 = vmatpush.bf16.msra.mxu1 %v709_v1  ;;  %v845_v56 = vor.u32 %v987_v53, %v842_v54  ;;  %v832_v59 = vld [vmem:[#allocation8 + $0x90] sm:$0xf]  ;;  %v769_v60 = vor.u32 %v970_v58, %v768_v57  ;;  %v986_v61 = vld [vmem:[#allocation8 + $0x94] sm:$0xf0]  ;;  %v969_v62 = vld [vmem:[#allocation8 + $0x14] sm:$0xf] }
  0x34   :  { %450 = vmatpush.bf16.msra.mxu2 %v777_v47  ;;  %v770_v63 = vld [vmem:[#allocation8 + $0x18] sm:$0xf0]  ;;  %v833_v0 = vor.u32 %v986_v61, %v832_v59  ;;  %v985_v2 = vld [vmem:[#allocation8 + $0x94] sm:$0xf]  ;;  %v760_v5 = vld [vmem:[#allocation8] sm:$0xf] }
  0x35   :  { %v773_v1 = vor.u32 %v969_v62, %v770_v63  ;;  %v834_v3 = vld [vmem:[#allocation8 + $0x98] sm:$0xf0]  ;;  %v968_v6 = vld [vmem:[#allocation8 + $0x4] sm:$0xf0]  ;;  %v824_v7 = vld [vmem:[#allocation8 + $0x80] sm:$0xf] }
  0x36   :  { %220 = vmatpush.bf16.msra.mxu0 %v697_v10  ;;  %464 = vmatpush.bf16.msra.mxu3 %v841_v51  ;;  %v837_v4 = vor.u32 %v985_v2, %v834_v3  ;;  %v761_v8 = vor.u32 %v968_v6, %v760_v5  ;;  %v984_v9 = vld [vmem:[#allocation8 + $0x84] sm:$0xf0]  ;;  %v967_v10 = vld [vmem:[#allocation8 + $0x4] sm:$0xf]  ;;  %v826_v15 = vld [vmem:[#allocation8 + $0x88] sm:$0xf0] }
  0x37   :  { %234 = vmatpush.bf16.msra.mxu1 %v701_v11  ;;  %v762_v11 = vld [vmem:[#allocation8 + $0x8] sm:$0xf0]  ;;  %v983_v14 = vld [vmem:[#allocation8 + $0x84] sm:$0xf]  ;;  %v1014_v17 = vld [vmem:[#allocation10 + $0x78] sm:$0xff]  ;;  %s673_s29 = sshll.u32 %s1187_s28, 4  ;;  %s674_s29 = int_to_ptr.vmem [resolvable:$true] %s673_s29 }
  0x38   :  { %451 = vmatpush.bf16.msra.mxu2 %v769_v60  ;;  %v1006_v18 = vld [vmem:[#allocation10 + $0x38] sm:$0xff]  ;;  %v1012_v21 = vld [vmem:[#allocation10 + $0x68] sm:$0xff]  ;;  %v1011_v22 = vld [vmem:[#allocation10 + $0x60] sm:$0xff]  ;;  %s675_s11 = sshll.u32 %s1268_s7, 4  ;;  %s676_s11 = int_to_ptr.hbm [resolvable:$true] %s675_s11 }
  0x39   :  { %221 = vmatmul.bf16.vlgmr.msra.gmra.mxu0 %v950_v16  ;;  %v121_v23 = vld [vmem:[#allocation7] sm:$0x3]  ;;  %v1004_v40 = vld [vmem:[#allocation10 + $0x28] sm:$0xff]  ;;  %v1003_v42 = vld [vmem:[#allocation10 + $0x20] sm:$0xff] }
  0x3a   :  { %473 = vmatpush.bf16.msrb.mxu0 %v821_v12  ;;  %235 = vmatmul.bf16.vlgmr.msra.gmra.mxu1 %v950_v16  ;;  %v825_v12 = vor.u32 %v984_v9, %v824_v7  ;;  %v829_v16 = vor.u32 %v983_v14, %v826_v15  ;;  %v124_v27 = vperm.slane %v121_v23, 1  ;;  %v1009_v43 = vld [vmem:[#allocation10 + $0x50] sm:$0xff]  ;;  %v1008_v45 = vld [vmem:[#allocation10 + $0x48] sm:$0xff]  ;;  %v1007_v47 = vld [vmem:[#allocation10 + $0x40] sm:$0xff] }
  0x3b   :  { %487 = vmatpush.bf16.msrb.mxu1 %v885_v13  ;;  %465 = vmatpush.bf16.msra.mxu3 %v833_v0  ;;  %v765_v13 = vor.u32 %v967_v10, %v762_v11  ;;  %v1001_v46 = vld [vmem:[#allocation10 + $0x10] sm:$0xff]  ;;  %v1000_v48 = vld [vmem:[#allocation10 + $0x8] sm:$0xff]  ;;  %v999_v49 = vld [vmem:[#allocation10] sm:$0xff] }
  0x3c   :  { %452 = vmatpush.bf16.msra.mxu2 %v761_v8  ;;  %v279_v50 = vld [vmem:[%s1265_s4] sm:$0x3] }
  0x3d   :  { %v282_v52 = vperm.slane %v279_v50, 1  ;;  %v1025_v11 = vld [vmem:[%s1267_s6] ss:$0 sm:$0xff] }
  0x3e   :  { %474 = vmatpush.bf16.msrb.mxu0 %v813_v19  ;;  %v1013_v19 = vld [vmem:[#allocation10 + $0x70] sm:$0xff] }
  0x3f   :  { %488 = vmatpush.bf16.msrb.mxu1 %v877_v20  ;;  %466 = vmatpush.bf16.msra.mxu3 %v825_v12  ;;  %v1005_v20 = vld [vmem:[#allocation10 + $0x30] sm:$0xff] }
  0x40   :  { %639 = vmatpush.bf16.msrb.mxu2 %v1006_v18 }
  0x42   :  { %475 = vmatpush.bf16.msrb.mxu0 %v805_v25 }
  0x43   :  { %489 = vmatpush.bf16.msrb.mxu1 %v869_v26  ;;  %653 = vmatpush.bf16.msrb.mxu3 %v1014_v17  ;;  %v123_v26 = vperm.slane %v121_v23, 0 }
  0x44   :  { %640 = vmatpush.bf16.msrb.mxu2 %v1005_v20 }
  0x46   :  { %476 = vmatpush.bf16.msrb.mxu0 %v797_v31 }
  0x47   :  { %490 = vmatpush.bf16.msrb.mxu1 %v861_v32  ;;  %654 = vmatpush.bf16.msrb.mxu3 %v1013_v19 }
  0x48   :  { %641 = vmatpush.bf16.msrb.mxu2 %v1004_v40 }
  0x4a   :  { %477 = vmatpush.bf16.msrb.mxu0 %v789_v41  ;;  %v1010_v41 = vld [vmem:[#allocation10 + $0x58] sm:$0xff] }
  0x4b   :  { %491 = vmatpush.bf16.msrb.mxu1 %v853_v44  ;;  %655 = vmatpush.bf16.msrb.mxu3 %v1012_v21  ;;  %v1002_v44 = vld [vmem:[#allocation10 + $0x18] sm:$0xff] }
  0x4c   :  { %642 = vmatpush.bf16.msrb.mxu2 %v1003_v42 }
  0x4e   :  { %478 = vmatpush.bf16.msrb.mxu0 %v781_v55 }
  0x4f   :  { %492 = vmatpush.bf16.msrb.mxu1 %v845_v56  ;;  %656 = vmatpush.bf16.msrb.mxu3 %v1011_v22  ;;  %v281_v56 = vperm.slane %v279_v50, 0 }
  0x50   :  { %643 = vmatpush.bf16.msrb.mxu2 %v1002_v44 }
  0x52   :  { %479 = vmatpush.bf16.msrb.mxu0 %v773_v1 }
  0x53   :  { %493 = vmatpush.bf16.msrb.mxu1 %v837_v4  ;;  %657 = vmatpush.bf16.msrb.mxu3 %v1010_v41 }
  0x54   :  { %644 = vmatpush.bf16.msrb.mxu2 %v1001_v46 }
  0x56   :  { %480 = vmatpush.bf16.msrb.mxu0 %v765_v13 }
  0x57   :  { %494 = vmatpush.bf16.msrb.mxu1 %v829_v16  ;;  %658 = vmatpush.bf16.msrb.mxu3 %v1009_v43 }
  0x58   :  { %645 = vmatpush.bf16.msrb.mxu2 %v1000_v48 }
  0x5b   :  { %659 = vmatpush.bf16.msrb.mxu3 %v1008_v45 }
  0x5c   :  { %646 = vmatpush.bf16.msrb.mxu2 %v999_v49 }
  0x5f   :  { %660 = vmatpush.bf16.msrb.mxu3 %v1007_v47 }
  0xb6   :  { %v222_v24 = vpop.f32.mrf.mxu0 }
  0xb7   :  { %v236_v25 = vpop.f32.mrf.mxu1  ;;  %v223_v28 = vadd.f32 %v222_v24, %v123_v26 }
  0xb8   :  { %v237_v29 = vadd.f32 %v236_v25, %v124_v27 }
  0xb9   :  { %v241_v34 = vmax.f32 %v223_v28, 0.0 }
  0xba   :  { %v242_v36 = vmax.f32 %v237_v29, 0.0 }
  0xbe   :  { %v224_v30 = vpop.f32.mrf.mxu0 }
  0xbf   :  { %v225_v31 = vadd.f32 %v224_v30, %v123_v26  ;;  %v238_v32 = vpop.f32.mrf.mxu1 }
  0xc0   :  { %v239_v33 = vadd.f32 %v238_v32, %v124_v27 }
  0xc1   :  { %v243_v35 = vmax.f32 %v225_v31, 0.0 }
  0xc2   :  { %v244_v37 = vmax.f32 %v239_v33, 0.0 }
  0xc3   :  { %v245_v38 = vpack.c.bf16 %v243_v35, %v241_v34 }
  0xc4   :  { %v246_v39 = vpack.c.bf16 %v244_v37, %v242_v36 }
  0xc5   :  { %453 = vmatmul.bf16.vlgmr.msra.gmra.mxu2 %v245_v38  ;;  %481 = vmatmul.bf16.vlgmr.msrb.gmra.mxu0 %v245_v38 }
  0xc6   :  { %467 = vmatmul.bf16.vlgmr.msra.gmra.mxu3 %v246_v39  ;;  %495 = vmatmul.bf16.vlgmr.msrb.gmra.mxu1 %v246_v39 }
 0x142   :  { %v482_v51 = vpop.f32.mrf.mxu0 }
 0x143   :  { %v496_v53 = vpop.f32.mrf.mxu1  ;;  %v483_v54 = vadd.f32 %v482_v51, %v282_v52 }
 0x145   :  { %v497_v59 = vadd.f32 %v496_v53, %v483_v54 }
 0x147   :  { %v502_v0 = vmax.f32 %v497_v59, 0.0 }
 0x148   :  { %v454_v55 = vpop.f32.mrf.mxu2 }
 0x149   :  { %v468_v57 = vpop.f32.mrf.mxu3  ;;  %v455_v62 = vadd.f32 %v454_v55, %v281_v56 }
 0x14a   :  { %v484_v58 = vpop.f32.mrf.mxu0 }
 0x14b   :  { %v485_v60 = vadd.f32 %v484_v58, %v282_v52  ;;  %v498_v61 = vpop.f32.mrf.mxu1  ;;  %v469_v3 = vadd.f32 %v468_v57, %v455_v62 }
 0x14d   :  { %v499_v63 = vadd.f32 %v498_v61, %v485_v60  ;;  %v501_v8 = vmax.f32 %v469_v3, 0.0 }
 0x14f   :  { %v504_v1 = vmax.f32 %v499_v63, 0.0 }
 0x150   :  { %v456_v2 = vpop.f32.mrf.mxu2 }
 0x151   :  { %v506_v4 = vpack.c.bf16 %v504_v1, %v502_v0  ;;  %v457_v5 = vadd.f32 %v456_v2, %v281_v56  ;;  %v470_v6 = vpop.f32.mrf.mxu3 }
 0x153   :  { %v471_v7 = vadd.f32 %v470_v6, %v457_v5  ;;  %661 = vmatmul.bf16.vlgmr.msrb.gmra.mxu3 %v506_v4 }
 0x155   :  { %v503_v9 = vmax.f32 %v471_v7, 0.0 }
 0x157   :  { %v505_v10 = vpack.c.bf16 %v503_v9, %v501_v8 }
 0x159   :  { %647 = vmatmul.bf16.vlgmr.msrb.gmra.mxu2 %v505_v10 }
 0x1d6   :  { %v662_v12 = vpop.f32.mrf.mxu3 }
 0x1dc   :  { %v648_v13 = vpop.f32.mrf.mxu2 }
 0x1dd   :  { %v649_v14 = vadd.f32 %v1025_v11, %v648_v13 }
 0x1de   :  { %v664_v18 = vpop.f32.mrf.mxu3 }
 0x1df   :  { %v663_v15 = vadd.f32 %v662_v12, %v649_v14 }
 0x1e1   :  { %667 = vst [vmem:[#allocation11] sm:$0xff] %v663_v15 }
 0x1e4   :  { %v650_v16 = vpop.f32.mrf.mxu2 }
 0x1e5   :  { %v651_v17 = vadd.f32 %v1025_v11, %v650_v16 }
 0x1e7   :  { %v665_v19 = vadd.f32 %v664_v18, %v651_v17 }
 0x1e9   :  { %668 = vst [vmem:[#allocation11 + $0x8] sm:$0xff] %v665_v19 }
 0x1ea   :  { %681 = dma.vmem_to_hbm [thread:$0]  %s674_s29, 256, %s676_s11, [#allocation4], %s1179_s9, %s1179_s9, %s1180_s10  }
 0x1eb   :  { %1176 = dma.done.wait [#allocation4], 256  }
 0x1ec   :  { %1177 = vsyncadd [#allocation4], 4294967040 }
 0x1ed   :  { %686 = vsyncpa [#allocation3], 1 }
 0x1ee   :  { %687 = vsyncpa [#allocation6], 1 }
 0x1ef   :  { %688 = vsyncpa [#allocation9], 1 }
 0x1f0   :  { %689 = vsyncpa [#allocation4], 1 }

// kernel: tpu_custom_call.1
= control target key start
LH: loop header
LB: loop body
LE: loop exit
PB: predicated region body
PF: predicated region fallthrough
CT: control target
= control target key end

     0   :  { %12 = vsyncpa [#allocation3], 0  ;;  %s1261_s0 = inlined_call_operand.hbm [shape: bf16[16,128], index: 0, kind: input, shape index: {}]   ;;  %s1262_s1 = inlined_call_operand.hbm [shape: bf16[128,256], index: 1, kind: input, shape index: {}]   ;;  %s1263_s2 = inlined_call_operand.hbm [shape: f32[1,256], index: 2, kind: input, shape index: {}]   ;;  %s1264_s3 = inlined_call_operand.hbm [shape: bf16[256,256], index: 3, kind: input, shape index: {}]   ;;  %s1265_s4 = inlined_call_operand.vmem [shape: f32[1,256], index: 4, kind: input, shape index: {}]   ;;  %s1266_s5 = inlined_call_operand.hbm [shape: bf16[256,128], index: 5, kind: input, shape index: {}]   ;;  %s1267_s6 = inlined_call_operand.vmem [shape: f32[1,128], index: 6, kind: input, shape index: {}]   ;;  %s1268_s7 = inlined_call_operand.hbm [shape: f32[16,128], index: 7, kind: output, shape index: {}]  }
   0x1   :  { %13 = vsyncpa [#allocation6], 0 }
   0x2   :  { %14 = vsyncpa [#allocation9], 0  ;;  %s33_s26 = sshll.u32 %s1262_s1, 4  ;;  %s34_s26 = int_to_ptr.hbm [resolvable:$true] %s33_s26 }
   0x3   :  { %15 = vsyncpa [#allocation4], 0  ;;  %s1178_s27 = smov [#allocation5]   ;;  %s57_s8 = sshll.u32 %s1264_s3, 4  ;;  %s58_s8 = int_to_ptr.hbm [resolvable:$true] %s57_s8 }
   0x4   :  { %s35_s28 = sshll.u32 %s1178_s27, 4  ;;  %s1179_s9 = smov 128   ;;  %s36_s28 = int_to_ptr.vmem [resolvable:$true] %s35_s28 }
   0x5   :  { %s1180_s10 = smov 8   ;;  %s1181_s11 = smov [#allocation8]  }
   0x6   :  { %41 = dma.hbm_to_vmem [thread:$0]  %s34_s26, 2048, %s36_s28, [#allocation6], %s1179_s9, %s1179_s9, %s1180_s10  }
   0x7   :  { %s59_s12 = sshll.u32 %s1181_s11, 4  ;;  %s20_s14 = sshll.u32 %s1261_s0, 4  ;;  %s60_s12 = int_to_ptr.vmem [resolvable:$true] %s59_s12  ;;  %s21_s14 = int_to_ptr.hbm [resolvable:$true] %s20_s14 }
   0x8   :  { %65 = dma.hbm_to_vmem [thread:$0]  %s58_s8, 4096, %s60_s12, [#allocation9], %s1179_s9, %s1179_s9, %s1180_s10  }
   0x9   :  { %s1182_s3 = smov [#allocation2]   ;;  %s47_s18 = sshll.u32 %s1263_s2, 4  ;;  %s48_s18 = int_to_ptr.hbm [resolvable:$true] %s47_s18 }
   0xa   :  { %s22_s15 = sshll.u32 %s1182_s3, 4  ;;  %s1183_s19 = smov 64   ;;  %s23_s15 = int_to_ptr.vmem [resolvable:$true] %s22_s15 }
   0xb   :  { %s1184_s20 = smov 4   ;;  %s1185_s21 = smov [#allocation7]  }
   0xc   :  { %28 = dma.hbm_to_vmem [thread:$0]  %s21_s14, 128, %s23_s15, [#allocation3], %s1183_s19, %s1183_s19, %s1184_s20  }
   0xd   :  { %s49_s22 = sshll.u32 %s1185_s21, 4  ;;  %s72_s24 = sshll.u32 %s1266_s5, 4  ;;  %s50_s22 = int_to_ptr.vmem [resolvable:$true] %s49_s22  ;;  %s73_s24 = int_to_ptr.hbm [resolvable:$true] %s72_s24 }
   0xe   :  { %52 = dma.hbm_to_vmem [thread:$0]  %s48_s18, 32, %s50_s22, [#allocation6]  }
   0xf   :  { %s1186_s25 = smov [#allocation10]  }
  0x10   :  { %s74_s26 = sshll.u32 %s1186_s25, 4  ;;  %s75_s26 = int_to_ptr.vmem [resolvable:$true] %s74_s26 }
  0x11   :  { %80 = dma.hbm_to_vmem [thread:$0]  %s73_s24, 2048, %s75_s26, [#allocation9], %s1183_s19, %s1183_s19, %s1184_s20  }
  0x12   :  { %1170 = dma.done.wait [#allocation3], 128  }
  0x13   :  { %1171 = vsyncadd [#allocation3], 4294967168 }
  0x14   :  { %1172 = dma.done.wait [#allocation6], 2080  }
  0x15   :  { %1173 = vsyncadd [#allocation6], 4294965216 }
  0x16   :  { %1174 = dma.done.wait [#allocation9], 6144  }
  0x17   :  { %1175 = vsyncadd [#allocation9], 4294961152  ;;  %v752_v0 = vld [vmem:[#allocation5 + $0x70] sm:$0xf]  ;;  %v966_v1 = vld [vmem:[#allocation5 + $0x74] sm:$0xf0] }
  0x18   :  { %v965_v2 = vld [vmem:[#allocation5 + $0x74] sm:$0xf]  ;;  %v753_v3 = vor.u32 %v966_v1, %v752_v0  ;;  %v754_v4 = vld [vmem:[#allocation5 + $0x78] sm:$0xf0]  ;;  %v744_v5 = vld [vmem:[#allocation5 + $0x60] sm:$0xf] }
  0x19   :  { %v964_v6 = vld [vmem:[#allocation5 + $0x64] sm:$0xf0]  ;;  %v757_v7 = vor.u32 %v965_v2, %v754_v4  ;;  %v963_v8 = vld [vmem:[#allocation5 + $0x64] sm:$0xf]  ;;  %v746_v9 = vld [vmem:[#allocation5 + $0x68] sm:$0xf0] }
  0x1a   :  { %213 = vmatpush.bf16.msra.mxu0 %v753_v3  ;;  %v745_v10 = vor.u32 %v964_v6, %v744_v5  ;;  %v749_v11 = vor.u32 %v963_v8, %v746_v9  ;;  %v736_v12 = vld [vmem:[#allocation5 + $0x50] sm:$0xf]  ;;  %v962_v13 = vld [vmem:[#allocation5 + $0x54] sm:$0xf0]  ;;  %v961_v14 = vld [vmem:[#allocation5 + $0x54] sm:$0xf] }
  0x1b   :  { %227 = vmatpush.bf16.msra.mxu1 %v757_v7  ;;  %v738_v15 = vld [vmem:[#allocation5 + $0x58] sm:$0xf0]  ;;  %v737_v16 = vor.u32 %v962_v13, %v736_v12  ;;  %v728_v18 = vld [vmem:[#allocation5 + $0x40] sm:$0xf]  ;;  %v960_v19 = vld [vmem:[#allocation5 + $0x44] sm:$0xf0] }
  0x1c   :  { %v741_v17 = vor.u32 %v961_v14, %v738_v15  ;;  %v959_v20 = vld [vmem:[#allocation5 + $0x44] sm:$0xf]  ;;  %v730_v21 = vld [vmem:[#allocation5 + $0x48] sm:$0xf0]  ;;  %v729_v22 = vor.u32 %v960_v19, %v728_v18  ;;  %v816_v23 = vld [vmem:[#allocation8 + $0x70] sm:$0xf] }
  0x1d   :  { %v982_v24 = vld [vmem:[#allocation8 + $0x74] sm:$0xf0]  ;;  %v880_v25 = vld [vmem:[#allocation8 + $0xf0] sm:$0xf]  ;;  %v733_v26 = vor.u32 %v959_v20, %v730_v21  ;;  %v808_v34 = vld [vmem:[#allocation8 + $0x60] sm:$0xf] }
  0x1e   :  { %214 = vmatpush.bf16.msra.mxu0 %v745_v10  ;;  %v720_v27 = vld [vmem:[#allocation5 + $0x30] sm:$0xf]  ;;  %v958_v28 = vld [vmem:[#allocation5 + $0x34] sm:$0xf0]  ;;  %v817_v29 = vor.u32 %v982_v24, %v816_v23  ;;  %v957_v31 = vld [vmem:[#allocation5 + $0x34] sm:$0xf] }
  0x1f   :  { %228 = vmatpush.bf16.msra.mxu1 %v749_v11  ;;  %v998_v30 = vld [vmem:[#allocation8 + $0xf4] sm:$0xf0]  ;;  %v980_v35 = vld [vmem:[#allocation8 + $0x64] sm:$0xf0]  ;;  %v872_v36 = vld [vmem:[#allocation8 + $0xe0] sm:$0xf]  ;;  %v721_v38 = vor.u32 %v958_v28, %v720_v27 }
  0x20   :  { %v722_v32 = vld [vmem:[#allocation5 + $0x38] sm:$0xf0]  ;;  %v881_v33 = vor.u32 %v998_v30, %v880_v25  ;;  %445 = vmatpush.bf16.msra.mxu2 %v817_v29  ;;  %v996_v37 = vld [vmem:[#allocation8 + $0xe4] sm:$0xf0]  ;;  %v712_v39 = vld [vmem:[#allocation5 + $0x20] sm:$0xf]  ;;  %v809_v41 = vor.u32 %v980_v35, %v808_v34 }
  0x21   :  { %v956_v40 = vld [vmem:[#allocation5 + $0x24] sm:$0xf0]  ;;  %v873_v42 = vor.u32 %v996_v37, %v872_v36  ;;  %v725_v43 = vor.u32 %v957_v31, %v722_v32  ;;  %v955_v44 = vld [vmem:[#allocation5 + $0x24] sm:$0xf]  ;;  %v800_v45 = vld [vmem:[#allocation8 + $0x50] sm:$0xf] }
  0x22   :  { %215 = vmatpush.bf16.msra.mxu0 %v737_v16  ;;  %459 = vmatpush.bf16.msra.mxu3 %v881_v33  ;;  %v978_v46 = vld [vmem:[#allocation8 + $0x54] sm:$0xf0]  ;;  %v714_v47 = vld [vmem:[#allocation5 + $0x28] sm:$0xf0]  ;;  %v864_v48 = vld [vmem:[#allocation8 + $0xd0] sm:$0xf]  ;;  %v713_v51 = vor.u32 %v956_v40, %v712_v39 }
  0x23   :  { %229 = vmatpush.bf16.msra.mxu1 %v741_v17  ;;  %v994_v49 = vld [vmem:[#allocation8 + $0xd4] sm:$0xf0]  ;;  %v801_v50 = vor.u32 %v978_v46, %v800_v45  ;;  %v704_v52 = vld [vmem:[#allocation5 + $0x10] sm:$0xf]  ;;  %v792_v54 = vld [vmem:[#allocation8 + $0x40] sm:$0xf]  ;;  %v717_v56 = vor.u32 %v955_v44, %v714_v47 }
  0x24   :  { %446 = vmatpush.bf16.msra.mxu2 %v809_v41  ;;  %v865_v53 = vor.u32 %v994_v49, %v864_v48  ;;  %v976_v55 = vld [vmem:[#allocation8 + $0x44] sm:$0xf0]  ;;  %v954_v57 = vld [vmem:[#allocation5 + $0x14] sm:$0xf0]  ;;  %v856_v58 = vld [vmem:[#allocation8 + $0xc0] sm:$0xf] }
  0x25   :  { %v992_v59 = vld [vmem:[#allocation8 + $0xc4] sm:$0xf0]  ;;  %v953_v60 = vld [vmem:[#allocation5 + $0x14] sm:$0xf]  ;;  %v706_v61 = vld [vmem:[#allocation5 + $0x18] sm:$0xf0]  ;;  %v793_v62 = vor.u32 %v976_v55, %v792_v54  ;;  %v705_v63 = vor.u32 %v954_v57, %v704_v52 }
  0x26   :  { %216 = vmatpush.bf16.msra.mxu0 %v729_v22  ;;  %460 = vmatpush.bf16.msra.mxu3 %v873_v42  ;;  %v857_v0 = vor.u32 %v992_v59, %v856_v58  ;;  %v709_v1 = vor.u32 %v953_v60, %v706_v61  ;;  %v696_v2 = vld [vmem:[#allocation5] sm:$0xf]  ;;  %v952_v3 = vld [vmem:[#allocation5 + $0x4] sm:$0xf0]  ;;  %v951_v4 = vld [vmem:[#allocation5 + $0x4] sm:$0xf] }
  0x27   :  { %230 = vmatpush.bf16.msra.mxu1 %v733_v26  ;;  %v698_v5 = vld [vmem:[#allocation5 + $0x8] sm:$0xf0]  ;;  %v981_v6 = vld [vmem:[#allocation8 + $0x74] sm:$0xf]  ;;  %v818_v7 = vld [vmem:[#allocation8 + $0x78] sm:$0xf0]  ;;  %v697_v10 = vor.u32 %v952_v3, %v696_v2 }
  0x28   :  { %447 = vmatpush.bf16.msra.mxu2 %v801_v50  ;;  %v997_v8 = vld [vmem:[#allocation8 + $0xf4] sm:$0xf]  ;;  %v882_v9 = vld [vmem:[#allocation8 + $0xf8] sm:$0xf0]  ;;  %v701_v11 = vor.u32 %v951_v4, %v698_v5  ;;  %v821_v12 = vor.u32 %v981_v6, %v818_v7  ;;  %v979_v14 = vld [vmem:[#allocation8 + $0x64] sm:$0xf] }
  0x29   :  { %v885_v13 = vor.u32 %v997_v8, %v882_v9  ;;  %v810_v15 = vld [vmem:[#allocation8 + $0x68] sm:$0xf0]  ;;  %v950_v16 = vld [vmem:[#allocation2] sm:$0xff]  ;;  %v995_v17 = vld [vmem:[#allocation8 + $0xe4] sm:$0xf]  ;;  %s1187_s28 = smov [#allocation11]  }
  0x2a   :  { %217 = vmatpush.bf16.msra.mxu0 %v721_v38  ;;  %461 = vmatpush.bf16.msra.mxu3 %v865_v53  ;;  %v874_v18 = vld [vmem:[#allocation8 + $0xe8] sm:$0xf0]  ;;  %v813_v19 = vor.u32 %v979_v14, %v810_v15  ;;  %v977_v21 = vld [vmem:[#allocation8 + $0x54] sm:$0xf]  ;;  %v802_v22 = vld [vmem:[#allocation8 + $0x58] sm:$0xf0] }
  0x2b   :  { %231 = vmatpush.bf16.msra.mxu1 %v725_v43  ;;  %v877_v20 = vor.u32 %v995_v17, %v874_v18  ;;  %v993_v23 = vld [vmem:[#allocation8 + $0xd4] sm:$0xf]  ;;  %v866_v24 = vld [vmem:[#allocation8 + $0xd8] sm:$0xf0]  ;;  %v805_v25 = vor.u32 %v977_v21, %v802_v22  ;;  %v975_v27 = vld [vmem:[#allocation8 + $0x44] sm:$0xf] }
  0x2c   :  { %448 = vmatpush.bf16.msra.mxu2 %v793_v62  ;;  %v869_v26 = vor.u32 %v993_v23, %v866_v24  ;;  %v794_v28 = vld [vmem:[#allocation8 + $0x48] sm:$0xf0]  ;;  %v991_v29 = vld [vmem:[#allocation8 + $0xc4] sm:$0xf]  ;;  %v784_v33 = vld [vmem:[#allocation8 + $0x30] sm:$0xf] }
  0x2d   :  { %v858_v30 = vld [vmem:[#allocation8 + $0xc8] sm:$0xf0]  ;;  %v797_v31 = vor.u32 %v975_v27, %v794_v28  ;;  %v974_v34 = vld [vmem:[#allocation8 + $0x34] sm:$0xf0]  ;;  %v848_v35 = vld [vmem:[#allocation8 + $0xb0] sm:$0xf] }
  0x2e   :  { %218 = vmatpush.bf16.msra.mxu0 %v713_v51  ;;  %462 = vmatpush.bf16.msra.mxu3 %v857_v0  ;;  %v861_v32 = vor.u32 %v991_v29, %v858_v30  ;;  %v785_v36 = vor.u32 %v974_v34, %v784_v33  ;;  %v990_v37 = vld [vmem:[#allocation8 + $0xb4] sm:$0xf0]  ;;  %v973_v38 = vld [vmem:[#allocation8 + $0x34] sm:$0xf]  ;;  %v786_v39 = vld [vmem:[#allocation8 + $0x38] sm:$0xf0] }
  0x2f   :  { %232 = vmatpush.bf16.msra.mxu1 %v717_v56  ;;  %v849_v40 = vor.u32 %v990_v37, %v848_v35  ;;  %v789_v41 = vor.u32 %v973_v38, %v786_v39  ;;  %v989_v42 = vld [vmem:[#allocation8 + $0xb4] sm:$0xf]  ;;  %v850_v43 = vld [vmem:[#allocation8 + $0xb8] sm:$0xf0]  ;;  %v776_v45 = vld [vmem:[#allocation8 + $0x20] sm:$0xf] }
  0x30   :  { %449 = vmatpush.bf16.msra.mxu2 %v785_v36  ;;  %v853_v44 = vor.u32 %v989_v42, %v850_v43  ;;  %v972_v46 = vld [vmem:[#allocation8 + $0x24] sm:$0xf0]  ;;  %v840_v48 = vld [vmem:[#allocation8 + $0xa0] sm:$0xf]  ;;  %v971_v50 = vld [vmem:[#allocation8 + $0x24] sm:$0xf] }
  0x31   :  { %v777_v47 = vor.u32 %v972_v46, %v776_v45  ;;  %v988_v49 = vld [vmem:[#allocation8 + $0xa4] sm:$0xf0]  ;;  %v778_v52 = vld [vmem:[#allocation8 + $0x28] sm:$0xf0]  ;;  %v987_v53 = vld [vmem:[#allocation8 + $0xa4] sm:$0xf] }
  0x32   :  { %219 = vmatpush.bf16.msra.mxu0 %v705_v63  ;;  %463 = vmatpush.bf16.msra.mxu3 %v849_v40  ;;  %v841_v51 = vor.u32 %v988_v49, %v840_v48  ;;  %v842_v54 = vld [vmem:[#allocation8 + $0xa8] sm:$0xf0]  ;;  %v781_v55 = vor.u32 %v971_v50, %v778_v52  ;;  %v768_v57 = vld [vmem:[#allocation8 + $0x10] sm:$0xf]  ;;  %v970_v58 = vld [vmem:[#allocation8 + $0x14] sm:$0xf0] }
  0x33   :  { %233 = vmatpush.bf16.msra.mxu1 %v709_v1  ;;  %v845_v56 = vor.u32 %v987_v53, %v842_v54  ;;  %v832_v59 = vld [vmem:[#allocation8 + $0x90] sm:$0xf]  ;;  %v769_v60 = vor.u32 %v970_v58, %v768_v57  ;;  %v986_v61 = vld [vmem:[#allocation8 + $0x94] sm:$0xf0]  ;;  %v969_v62 = vld [vmem:[#allocation8 + $0x14] sm:$0xf] }
  0x34   :  { %450 = vmatpush.bf16.msra.mxu2 %v777_v47  ;;  %v770_v63 = vld [vmem:[#allocation8 + $0x18] sm:$0xf0]  ;;  %v833_v0 = vor.u32 %v986_v61, %v832_v59  ;;  %v985_v2 = vld [vmem:[#allocation8 + $0x94] sm:$0xf]  ;;  %v760_v5 = vld [vmem:[#allocation8] sm:$0xf] }
  0x35   :  { %v773_v1 = vor.u32 %v969_v62, %v770_v63  ;;  %v834_v3 = vld [vmem:[#allocation8 + $0x98] sm:$0xf0]  ;;  %v968_v6 = vld [vmem:[#allocation8 + $0x4] sm:$0xf0]  ;;  %v824_v7 = vld [vmem:[#allocation8 + $0x80] sm:$0xf] }
  0x36   :  { %220 = vmatpush.bf16.msra.mxu0 %v697_v10  ;;  %464 = vmatpush.bf16.msra.mxu3 %v841_v51  ;;  %v837_v4 = vor.u32 %v985_v2, %v834_v3  ;;  %v761_v8 = vor.u32 %v968_v6, %v760_v5  ;;  %v984_v9 = vld [vmem:[#allocation8 + $0x84] sm:$0xf0]  ;;  %v967_v10 = vld [vmem:[#allocation8 + $0x4] sm:$0xf]  ;;  %v826_v15 = vld [vmem:[#allocation8 + $0x88] sm:$0xf0] }
  0x37   :  { %234 = vmatpush.bf16.msra.mxu1 %v701_v11  ;;  %v762_v11 = vld [vmem:[#allocation8 + $0x8] sm:$0xf0]  ;;  %v983_v14 = vld [vmem:[#allocation8 + $0x84] sm:$0xf]  ;;  %v1014_v17 = vld [vmem:[#allocation10 + $0x78] sm:$0xff]  ;;  %s673_s29 = sshll.u32 %s1187_s28, 4  ;;  %s674_s29 = int_to_ptr.vmem [resolvable:$true] %s673_s29 }
  0x38   :  { %451 = vmatpush.bf16.msra.mxu2 %v769_v60  ;;  %v1006_v18 = vld [vmem:[#allocation10 + $0x38] sm:$0xff]  ;;  %v1012_v21 = vld [vmem:[#allocation10 + $0x68] sm:$0xff]  ;;  %v1011_v22 = vld [vmem:[#allocation10 + $0x60] sm:$0xff]  ;;  %s675_s11 = sshll.u32 %s1268_s7, 4  ;;  %s676_s11 = int_to_ptr.hbm [resolvable:$true] %s675_s11 }
  0x39   :  { %221 = vmatmul.bf16.vlgmr.msra.gmra.mxu0 %v950_v16  ;;  %v121_v23 = vld [vmem:[#allocation7] sm:$0x3]  ;;  %v1004_v40 = vld [vmem:[#allocation10 + $0x28] sm:$0xff]  ;;  %v1003_v42 = vld [vmem:[#allocation10 + $0x20] sm:$0xff] }
  0x3a   :  { %473 = vmatpush.bf16.msrb.mxu0 %v821_v12  ;;  %235 = vmatmul.bf16.vlgmr.msra.gmra.mxu1 %v950_v16  ;;  %v825_v12 = vor.u32 %v984_v9, %v824_v7  ;;  %v829_v16 = vor.u32 %v983_v14, %v826_v15  ;;  %v124_v27 = vperm.slane %v121_v23, 1  ;;  %v1009_v43 = vld [vmem:[#allocation10 + $0x50] sm:$0xff]  ;;  %v1008_v45 = vld [vmem:[#allocation10 + $0x48] sm:$0xff]  ;;  %v1007_v47 = vld [vmem:[#allocation10 + $0x40] sm:$0xff] }
  0x3b   :  { %487 = vmatpush.bf16.msrb.mxu1 %v885_v13  ;;  %465 = vmatpush.bf16.msra.mxu3 %v833_v0  ;;  %v765_v13 = vor.u32 %v967_v10, %v762_v11  ;;  %v1001_v46 = vld [vmem:[#allocation10 + $0x10] sm:$0xff]  ;;  %v1000_v48 = vld [vmem:[#allocation10 + $0x8] sm:$0xff]  ;;  %v999_v49 = vld [vmem:[#allocation10] sm:$0xff] }
  0x3c   :  { %452 = vmatpush.bf16.msra.mxu2 %v761_v8  ;;  %v279_v50 = vld [vmem:[%s1265_s4] sm:$0x3] }
  0x3d   :  { %v282_v52 = vperm.slane %v279_v50, 1  ;;  %v1025_v11 = vld [vmem:[%s1267_s6] ss:$0 sm:$0xff] }
  0x3e   :  { %474 = vmatpush.bf16.msrb.mxu0 %v813_v19  ;;  %v1013_v19 = vld [vmem:[#allocation10 + $0x70] sm:$0xff] }
  0x3f   :  { %488 = vmatpush.bf16.msrb.mxu1 %v877_v20  ;;  %466 = vmatpush.bf16.msra.mxu3 %v825_v12  ;;  %v1005_v20 = vld [vmem:[#allocation10 + $0x30] sm:$0xff] }
  0x40   :  { %639 = vmatpush.bf16.msrb.mxu2 %v1006_v18 }
  0x42   :  { %475 = vmatpush.bf16.msrb.mxu0 %v805_v25 }
  0x43   :  { %489 = vmatpush.bf16.msrb.mxu1 %v869_v26  ;;  %653 = vmatpush.bf16.msrb.mxu3 %v1014_v17  ;;  %v123_v26 = vperm.slane %v121_v23, 0 }
  0x44   :  { %640 = vmatpush.bf16.msrb.mxu2 %v1005_v20 }
  0x46   :  { %476 = vmatpush.bf16.msrb.mxu0 %v797_v31 }
  0x47   :  { %490 = vmatpush.bf16.msrb.mxu1 %v861_v32  ;;  %654 = vmatpush.bf16.msrb.mxu3 %v1013_v19 }
  0x48   :  { %641 = vmatpush.bf16.msrb.mxu2 %v1004_v40 }
  0x4a   :  { %477 = vmatpush.bf16.msrb.mxu0 %v789_v41  ;;  %v1010_v41 = vld [vmem:[#allocation10 + $0x58] sm:$0xff] }
  0x4b   :  { %491 = vmatpush.bf16.msrb.mxu1 %v853_v44  ;;  %655 = vmatpush.bf16.msrb.mxu3 %v1012_v21  ;;  %v1002_v44 = vld [vmem:[#allocation10 + $0x18] sm:$0xff] }
  0x4c   :  { %642 = vmatpush.bf16.msrb.mxu2 %v1003_v42 }
  0x4e   :  { %478 = vmatpush.bf16.msrb.mxu0 %v781_v55 }
  0x4f   :  { %492 = vmatpush.bf16.msrb.mxu1 %v845_v56  ;;  %656 = vmatpush.bf16.msrb.mxu3 %v1011_v22  ;;  %v281_v56 = vperm.slane %v279_v50, 0 }
  0x50   :  { %643 = vmatpush.bf16.msrb.mxu2 %v1002_v44 }
  0x52   :  { %479 = vmatpush.bf16.msrb.mxu0 %v773_v1 }
  0x53   :  { %493 = vmatpush.bf16.msrb.mxu1 %v837_v4  ;;  %657 = vmatpush.bf16.msrb.mxu3 %v1010_v41 }
  0x54   :  { %644 = vmatpush.bf16.msrb.mxu2 %v1001_v46 }
  0x56   :  { %480 = vmatpush.bf16.msrb.mxu0 %v765_v13 }
  0x57   :  { %494 = vmatpush.bf16.msrb.mxu1 %v829_v16  ;;  %658 = vmatpush.bf16.msrb.mxu3 %v1009_v43 }
  0x58   :  { %645 = vmatpush.bf16.msrb.mxu2 %v1000_v48 }
  0x5b   :  { %659 = vmatpush.bf16.msrb.mxu3 %v1008_v45 }
  0x5c   :  { %646 = vmatpush.bf16.msrb.mxu2 %v999_v49 }
  0x5f   :  { %660 = vmatpush.bf16.msrb.mxu3 %v1007_v47 }
  0xb6   :  { %v222_v24 = vpop.f32.mrf.mxu0 }
  0xb7   :  { %v236_v25 = vpop.f32.mrf.mxu1  ;;  %v223_v28 = vadd.f32 %v222_v24, %v123_v26 }
  0xb8   :  { %v237_v29 = vadd.f32 %v236_v25, %v124_v27 }
  0xb9   :  { %v241_v34 = vmax.f32 %v223_v28, 0.0 }
  0xba   :  { %v242_v36 = vmax.f32 %v237_v29, 0.0 }
  0xbe   :  { %v224_v30 = vpop.f32.mrf.mxu0 }
  0xbf   :  { %v225_v31 = vadd.f32 %v224_v30, %v123_v26  ;;  %v238_v32 = vpop.f32.mrf.mxu1 }
  0xc0   :  { %v239_v33 = vadd.f32 %v238_v32, %v124_v27 }
  0xc1   :  { %v243_v35 = vmax.f32 %v225_v31, 0.0 }
  0xc2   :  { %v244_v37 = vmax.f32 %v239_v33, 0.0 }
  0xc3   :  { %v245_v38 = vpack.c.bf16 %v243_v35, %v241_v34 }
  0xc4   :  { %v246_v39 = vpack.c.bf16 %v244_v37, %v242_v36 }
  0xc5   :  { %453 = vmatmul.bf16.vlgmr.msra.gmra.mxu2 %v245_v38  ;;  %481 = vmatmul.bf16.vlgmr.msrb.gmra.mxu0 %v245_v38 }
  0xc6   :  { %467 = vmatmul.bf16.vlgmr.msra.gmra.mxu3 %v246_v39  ;;  %495 = vmatmul.bf16.vlgmr.msrb.gmra.mxu1 %v246_v39 }
 0x142   :  { %v482_v51 = vpop.f32.mrf.mxu0 }
 0x143   :  { %v496_v53 = vpop.f32.mrf.mxu1  ;;  %v483_v54 = vadd.f32 %v482_v51, %v282_v52 }
 0x145   :  { %v497_v59 = vadd.f32 %v496_v53, %v483_v54 }
 0x147   :  { %v502_v0 = vmax.f32 %v497_v59, 0.0 }
 0x148   :  { %v454_v55 = vpop.f32.mrf.mxu2 }
 0x149   :  { %v468_v57 = vpop.f32.mrf.mxu3  ;;  %v455_v62 = vadd.f32 %v454_v55, %v281_v56 }
 0x14a   :  { %v484_v58 = vpop.f32.mrf.mxu0 }
 0x14b   :  { %v485_v60 = vadd.f32 %v484_v58, %v282_v52  ;;  %v498_v61 = vpop.f32.mrf.mxu1  ;;  %v469_v3 = vadd.f32 %v468_v57, %v455_v62 }
 0x14d   :  { %v499_v63 = vadd.f32 %v498_v61, %v485_v60  ;;  %v501_v8 = vmax.f32 %v469_v3, 0.0 }
 0x14f   :  { %v504_v1 = vmax.f32 %v499_v63, 0.0 }
 0x150   :  { %v456_v2 = vpop.f32.mrf.mxu2 }
 0x151   :  { %v506_v4 = vpack.c.bf16 %v504_v1, %v502_v0  ;;  %v457_v5 = vadd.f32 %v456_v2, %v281_v56  ;;  %v470_v6 = vpop.f32.mrf.mxu3 }
 0x153   :  { %v471_v7 = vadd.f32 %v470_v6, %v457_v5  ;;  %661 = vmatmul.bf16.vlgmr.msrb.gmra.mxu3 %v506_v4 }
 0x155   :  { %v503_v9 = vmax.f32 %v471_v7, 0.0 }
 0x157   :  { %v505_v10 = vpack.c.bf16 %v503_v9, %v501_v8 }
 0x159   :  { %647 = vmatmul.bf16.vlgmr.msrb.gmra.mxu2 %v505_v10 }
 0x1d6   :  { %v662_v12 = vpop.f32.mrf.mxu3 }
 0x1dc   :  { %v648_v13 = vpop.f32.mrf.mxu2 }
 0x1dd   :  { %v649_v14 = vadd.f32 %v1025_v11, %v648_v13 }
 0x1de   :  { %v664_v18 = vpop.f32.mrf.mxu3 }
 0x1df   :  { %v663_v15 = vadd.f32 %v662_v12, %v649_v14 }
 0x1e1   :  { %667 = vst [vmem:[#allocation11] sm:$0xff] %v663_v15 }
 0x1e4   :  { %v650_v16 = vpop.f32.mrf.mxu2 }
 0x1e5   :  { %v651_v17 = vadd.f32 %v1025_v11, %v650_v16 }
 0x1e7   :  { %v665_v19 = vadd.f32 %v664_v18, %v651_v17 }
 0x1e9   :  { %668 = vst [vmem:[#allocation11 + $0x8] sm:$0xff] %v665_v19 }
 0x1ea   :  { %681 = dma.vmem_to_hbm [thread:$0]  %s674_s29, 256, %s676_s11, [#allocation4], %s1179_s9, %s1179_s9, %s1180_s10  }
 0x1eb   :  { %1176 = dma.done.wait [#allocation4], 256  }
 0x1ec   :  { %1177 = vsyncadd [#allocation4], 4294967040 }
 0x1ed   :  { %686 = vsyncpa [#allocation3], 1 }
 0x1ee   :  { %687 = vsyncpa [#allocation6], 1 }
 0x1ef   :  { %688 = vsyncpa [#allocation9], 1 }
 0x1f0   :  { %689 = vsyncpa [#allocation4], 1 }

</bundles_post_ra>
